<compile_context>
chip_gen: v6e
topology: v6e:2x2x1
jax: 0.10.0
libtpu: 0.0.40
codegen_flags: <defaults>
</compile_context>

<pallas_src>
import jax
import jax.numpy as jnp
from jax.experimental import pallas as pl
from jax.experimental.pallas import tpu as pltpu


_VMEM_SPEC = pl.BlockSpec(memory_space=pltpu.MemorySpace.VMEM)


def _round_up(n, m):
    return ((n + m - 1) // m) * m


def _mlp_body(xs_f32, w1_bf16, b1_f32, w2_bf16, b2_f32):
    """Two-layer MLP on a (M_pad, D) f32 slab; returns (M_pad, E) f32."""
    # Layer 1: bf16 x bf16 MXU matmul, f32 accumulate; bias + ReLU in f32 (VPU).
    h = jnp.dot(xs_f32.astype(jnp.bfloat16), w1_bf16,
                preferred_element_type=jnp.float32)
    h = jnp.maximum(h + b1_f32, 0.0)
    # Layer 2: also bf16 x bf16 on the MXU (avoids the decomposed f32 MXU path,
    # biggest relative win on v5e); accumulation and bias add stay f32.
    out = jnp.dot(h.astype(jnp.bfloat16), w2_bf16,
                  preferred_element_type=jnp.float32) + b2_f32
    return out


def _triplet_kernel(x1_ref, x2_ref, x3_ref, w1_ref, b1_ref, w2_ref, b2_ref,
                    o_ref, xs_ref):
    """Embed the whole triplet batch in one shot.

    x*_ref : (B, D)      f32
    w1_ref : (D, H)      bf16
    b1_ref : (1, H)      f32
    w2_ref : (H, E)      bf16
    b2_ref : (1, E)      f32
    o_ref  : (M_pad, E)  f32   (rows [0:3B) valid, rest padding)
    xs_ref : (M_pad, D)  f32   VMEM scratch slab
    """
    B = x1_ref.shape[0]
    # Build the slab in VMEM: zero the pad rows (keeps padded outputs benign),
    # then drop the three flat inputs into rows [0:3B).  The stack/pad work
    # happens here instead of as XLA passes around the call.
    xs_ref[...] = jnp.zeros_like(xs_ref)
    xs_ref[0:B, :] = x1_ref[...]
    xs_ref[B:2 * B, :] = x2_ref[...]
    xs_ref[2 * B:3 * B, :] = x3_ref[...]
    o_ref[...] = _mlp_body(xs_ref[...], w1_ref[...], b1_ref[...],
                           w2_ref[...], b2_ref[...]).astype(o_ref.dtype)


def _single_kernel(x_ref, w1_ref, b1_ref, w2_ref, b2_ref, o_ref, xs_ref):
    """Same body, single input (get_embedding path)."""
    B = x_ref.shape[0]
    xs_ref[...] = jnp.zeros_like(xs_ref)
    xs_ref[0:B, :] = x_ref[...]
    o_ref[...] = _mlp_body(xs_ref[...], w1_ref[...], b1_ref[...],
                           w2_ref[...], b2_ref[...]).astype(o_ref.dtype)


def _cost_estimate(m_pad, n_x_rows, D, H, E):
    bytes_accessed = (
        n_x_rows * D * 4      # f32 inputs
        + D * H * 2           # bf16 W1
        + H * 4               # f32 b1
        + H * E * 2           # bf16 W2
        + E * 4               # f32 b2
        + m_pad * E * 4       # f32 output
    )
    return pl.CostEstimate(flops=2 * m_pad * (D * H + H * E),
                           transcendentals=0,
                           bytes_accessed=bytes_accessed)


def prepare_params(params):
    """One-time weight prep (hoisted out of the per-step forward).

    Casts W1/W2 to bfloat16 for the MXU and biases to (1, N) float32.  Do this
    ONCE at init; the forward then reads pre-cast weights and pays no per-call
    convert pass over the (dominant) W1 bytes.
    """
    w1, b1, w2, b2 = params
    return (w1.astype(jnp.bfloat16),
            b1.astype(jnp.float32).reshape(1, -1),
            w2.astype(jnp.bfloat16),
            b2.astype(jnp.float32).reshape(1, -1))


def triplet_net_forward(x1, x2, x3, prepared_params):
    """Pallas implementation of TripletNet.forward(x1, x2, x3)."""
    w1, b1, w2, b2 = prepared_params
    B = x1.shape[0]
    D, H = w1.shape
    E = w2.shape[1]
    m = 3 * B
    m_pad = _round_up(m, 16)   # bf16 packs 16 sublanes per vreg

    # Only free row-major reshapes remain in the wrapper; stack/pad/cast is
    # done inside the kernel.
    x1f = x1.reshape(B, D).astype(jnp.float32)
    x2f = x2.reshape(B, D).astype(jnp.float32)
    x3f = x3.reshape(B, D).astype(jnp.float32)

    out_padded = pl.pallas_call(
        _triplet_kernel,
        out_shape=jax.ShapeDtypeStruct((m_pad, E), jnp.float32),
        in_specs=[_VMEM_SPEC] * 7,
        out_specs=_VMEM_SPEC,
        scratch_shapes=[pltpu.VMEM((m_pad, D), jnp.float32)],
        cost_estimate=_cost_estimate(m_pad, m, D, H, E),
    )(x1f, x2f, x3f, w1, b1, w2, b2)

    out = out_padded[:m].reshape(3, B, E)
    return out[0], out[1], out[2]


def get_embedding(x, prepared_params):
    """Pallas implementation of TripletNet.get_embedding(x).

    Single-input path: one (B, D) slab through the same kernel body — ~3x less
    matmul work and input DMA than routing through triplet_net_forward(x,x,x).
    """
    w1, b1, w2, b2 = prepared_params
    B = x.shape[0]
    D, H = w1.shape
    E = w2.shape[1]
    m_pad = _round_up(B, 16)

    xf = x.reshape(B, D).astype(jnp.float32)

    out_padded = pl.pallas_call(
        _single_kernel,
        out_shape=jax.ShapeDtypeStruct((m_pad, E), jnp.float32),
        in_specs=[_VMEM_SPEC] * 5,
        out_specs=_VMEM_SPEC,
        scratch_shapes=[pltpu.VMEM((m_pad, D), jnp.float32)],
        cost_estimate=_cost_estimate(m_pad, B, D, H, E),
    )(xf, w1, b1, w2, b2)

    return out_padded[:B]


def init_params(key, d_in, hidden, embed):
    """Deterministic parameter init (PyTorch-Linear-style uniform fan-in)."""
    k1, k2, k3, k4 = jax.random.split(key, 4)
    lim1 = 1.0 / jnp.sqrt(d_in)
    lim2 = 1.0 / jnp.sqrt(hidden)
    w1 = jax.random.uniform(k1, (d_in, hidden), jnp.float32, -lim1, lim1)
    b1 = jax.random.uniform(k2, (1, hidden), jnp.float32, -lim1, lim1)
    w2 = jax.random.uniform(k3, (hidden, embed), jnp.float32, -lim2, lim2)
    b2 = jax.random.uniform(k4, (1, embed), jnp.float32, -lim2, lim2)
    return w1, b1, w2, b2


if __name__ == "__main__":
    # Small shapes consistent with an image-triplet forward: NCHW = (2,4,16,16).
    B, C, Himg, Wimg = 2, 4, 16, 16
    D = C * Himg * Wimg        # 1024
    HID, EMB = 128, 128

    key = jax.random.PRNGKey(0)
    kx1, kx2, kx3, kp = jax.random.split(key, 4)
    x1 = jax.random.normal(kx1, (B, C, Himg, Wimg), jnp.float32)
    x2 = jax.random.normal(kx2, (B, C, Himg, Wimg), jnp.float32)
    x3 = jax.random.normal(kx3, (B, C, Himg, Wimg), jnp.float32)
    params = init_params(kp, D, HID, EMB)

    # One-time weight prep (hoisted out of the per-step path).
    prep = prepare_params(params)

    fwd = jax.jit(triplet_net_forward)
    o1, o2, o3 = fwd(x1, x2, x3, prep)
    jax.block_until_ready((o1, o2, o3))

    w1, b1, w2, b2 = params

    # Reference that mirrors the kernel's mixed precision (bf16 matmuls with
    # f32 accumulation, f32 bias/ReLU).
    def ref_embed_mixed(x):
        xf = x.reshape(B, -1).astype(jnp.bfloat16)
        h = jnp.dot(xf, w1.astype(jnp.bfloat16),
                    preferred_element_type=jnp.float32) + b1
        h = jnp.maximum(h, 0.0)
        return jnp.dot(h.astype(jnp.bfloat16), w2.astype(jnp.bfloat16),
                       preferred_element_type=jnp.float32) + b2

    # Pure-f32 reference (original module semantics) — loose tolerance since
    # both matmuls run in bf16 inside the kernel.
    def ref_embed_f32(x):
        h = jnp.maximum(x.reshape(B, -1) @ w1 + b1, 0.0)
        return h @ w2 + b2

    assert o1.shape == (B, EMB) and o2.shape == (B, EMB) and o3.shape == (B, EMB)
    for o, x in ((o1, x1), (o2, x2), (o3, x3)):
        assert jnp.allclose(o, ref_embed_mixed(x), atol=1e-3, rtol=1e-3)
        assert jnp.allclose(o, ref_embed_f32(x), atol=5e-2, rtol=5e-2)

    # Weight sharing / get_embedding consistency (dedicated single-input path).
    e1 = jax.jit(get_embedding)(x1, prep)
    jax.block_until_ready(e1)
    assert e1.shape == (B, EMB)
    assert jnp.allclose(e1, o1, atol=1e-5, rtol=1e-5)

    print("KERNEL_OK")
</pallas_src>

<mosaic_0001>
module attributes {stable_mosaic.version = 11 : i64} {
  func.func @_triplet_kernel(%arg0: memref<2x1024xf32, #tpu.memory_space<vmem>>, %arg1: memref<2x1024xf32, #tpu.memory_space<vmem>>, %arg2: memref<2x1024xf32, #tpu.memory_space<vmem>>, %arg3: memref<1024x128xbf16, #tpu.memory_space<vmem>>, %arg4: memref<1x128xf32, #tpu.memory_space<vmem>>, %arg5: memref<128x128xbf16, #tpu.memory_space<vmem>>, %arg6: memref<1x128xf32, #tpu.memory_space<vmem>>, %arg7: memref<16x128xf32, #tpu.memory_space<vmem>>, %arg8: memref<16x1024xf32, #tpu.memory_space<vmem>>) attributes {dimension_semantics = [], scalar_prefetch = 0 : i64, scratch_operands = 1 : i64, tpu.core_type = #tpu.core_type<tc>} {
    %cst = arith.constant 0.000000e+00 : f32
    %0 = vector.broadcast %cst : f32 to vector<16x1024xf32>
    %c0 = arith.constant 0 : index
    %c0_0 = arith.constant 0 : index
    %1 = vector.load %arg8[%c0, %c0_0] : memref<16x1024xf32, #tpu.memory_space<vmem>>, vector<16x1024xf32>
    tpu.vector_store %arg8[%c0, %c0_0], %0 {strides = array<i32>} : memref<16x1024xf32, #tpu.memory_space<vmem>>, vector<16x1024xf32>,
    %c0_1 = arith.constant 0 : index
    %c0_2 = arith.constant 0 : index
    %2 = vector.load %arg0[%c0_1, %c0_2] : memref<2x1024xf32, #tpu.memory_space<vmem>>, vector<2x1024xf32>
    %c0_3 = arith.constant 0 : index
    %c0_4 = arith.constant 0 : index
    %3 = vector.load %arg8[%c0_3, %c0_4] : memref<16x1024xf32, #tpu.memory_space<vmem>>, vector<2x1024xf32>
    tpu.vector_store %arg8[%c0_3, %c0_4], %2 {strides = array<i32>} : memref<16x1024xf32, #tpu.memory_space<vmem>>, vector<2x1024xf32>,
    %c0_5 = arith.constant 0 : index
    %c0_6 = arith.constant 0 : index
    %4 = vector.load %arg1[%c0_5, %c0_6] : memref<2x1024xf32, #tpu.memory_space<vmem>>, vector<2x1024xf32>
    %c2 = arith.constant 2 : index
    %c0_7 = arith.constant 0 : index
    %5 = vector.load %arg8[%c2, %c0_7] : memref<16x1024xf32, #tpu.memory_space<vmem>>, vector<2x1024xf32>
    tpu.vector_store %arg8[%c2, %c0_7], %4 {strides = array<i32>} : memref<16x1024xf32, #tpu.memory_space<vmem>>, vector<2x1024xf32>,
    %c0_8 = arith.constant 0 : index
    %c0_9 = arith.constant 0 : index
    %6 = vector.load %arg2[%c0_8, %c0_9] : memref<2x1024xf32, #tpu.memory_space<vmem>>, vector<2x1024xf32>
    %c4 = arith.constant 4 : index
    %c0_10 = arith.constant 0 : index
    %7 = vector.load %arg8[%c4, %c0_10] : memref<16x1024xf32, #tpu.memory_space<vmem>>, vector<2x1024xf32>
    tpu.vector_store %arg8[%c4, %c0_10], %6 {strides = array<i32>} : memref<16x1024xf32, #tpu.memory_space<vmem>>, vector<2x1024xf32>,
    %c0_11 = arith.constant 0 : index
    %c0_12 = arith.constant 0 : index
    %8 = vector.load %arg8[%c0_11, %c0_12] : memref<16x1024xf32, #tpu.memory_space<vmem>>, vector<16x1024xf32>
    %c0_13 = arith.constant 0 : index
    %c0_14 = arith.constant 0 : index
    %9 = vector.load %arg3[%c0_13, %c0_14] : memref<1024x128xbf16, #tpu.memory_space<vmem>>, vector<1024x128xbf16>
    %c0_15 = arith.constant 0 : index
    %c0_16 = arith.constant 0 : index
    %10 = vector.load %arg4[%c0_15, %c0_16] : memref<1x128xf32, #tpu.memory_space<vmem>>, vector<1x128xf32>
    %c0_17 = arith.constant 0 : index
    %c0_18 = arith.constant 0 : index
    %11 = vector.load %arg5[%c0_17, %c0_18] : memref<128x128xbf16, #tpu.memory_space<vmem>>, vector<128x128xbf16>
    %c0_19 = arith.constant 0 : index
    %c0_20 = arith.constant 0 : index
    %12 = vector.load %arg6[%c0_19, %c0_20] : memref<1x128xf32, #tpu.memory_space<vmem>>, vector<1x128xf32>
    %13 = arith.truncf %8 : vector<16x1024xf32> to vector<16x1024xbf16>
    %cst_21 = arith.constant dense<0.000000e+00> : vector<16x128xf32>
    %14 = tpu.matmul %13, %9, %cst_21 {dimension_numbers = #tpu.dot_dimension_numbers<[1], [0], [0], [1], [0, 0, 1, 1], [], []>} : vector<16x1024xbf16>, vector<1024x128xbf16>, vector<16x128xf32> -> vector<16x128xf32>
    %15 = vector.broadcast %10 : vector<1x128xf32> to vector<16x128xf32>
    %16 = arith.addf %14, %15 : vector<16x128xf32>
    %cst_22 = arith.constant 0.000000e+00 : f32
    %17 = vector.broadcast %cst_22 : f32 to vector<16x128xf32>
    %18 = arith.maximumf %16, %17 : vector<16x128xf32>
    %19 = arith.truncf %18 : vector<16x128xf32> to vector<16x128xbf16>
    %cst_23 = arith.constant dense<0.000000e+00> : vector<16x128xf32>
    %20 = tpu.matmul %19, %11, %cst_23 {dimension_numbers = #tpu.dot_dimension_numbers<[1], [0], [0], [1], [0, 0, 1, 1], [], []>} : vector<16x128xbf16>, vector<128x128xbf16>, vector<16x128xf32> -> vector<16x128xf32>
    %21 = vector.broadcast %12 : vector<1x128xf32> to vector<16x128xf32>
    %22 = arith.addf %20, %21 : vector<16x128xf32>
    %c0_24 = arith.constant 0 : index
    %c0_25 = arith.constant 0 : index
    %23 = vector.load %arg7[%c0_24, %c0_25] : memref<16x128xf32, #tpu.memory_space<vmem>>, vector<16x128xf32>
    tpu.vector_store %arg7[%c0_24, %c0_25], %22 {strides = array<i32>} : memref<16x128xf32, #tpu.memory_space<vmem>>, vector<16x128xf32>,
    return
  }
}

</mosaic_0001>

<bundles_post_ra>
// kernel: triplet_net_forward.1
= control target key start
LH: loop header
LB: loop body
LE: loop exit
PB: predicated region body
PF: predicated region fallthrough
CT: control target
= control target key end

     0   :  { %12 = vsyncpa [#allocation4], 0  ;;  %s1353_s24 = smov [#allocation3]   ;;  %s1495_s0 = inlined_call_operand.vmem [shape: f32[2,1024], index: 0, kind: input, shape index: {}]   ;;  %s1496_s1 = inlined_call_operand.vmem [shape: f32[2,1024], index: 1, kind: input, shape index: {}]   ;;  %s1497_s2 = inlined_call_operand.vmem [shape: f32[2,1024], index: 2, kind: input, shape index: {}]   ;;  %s1498_s3 = inlined_call_operand.hbm [shape: bf16[1024,128], index: 3, kind: input, shape index: {}]   ;;  %s1499_s4 = inlined_call_operand.vmem [shape: f32[1,128], index: 4, kind: input, shape index: {}]   ;;  %s1500_s5 = inlined_call_operand.vmem [shape: bf16[128,128], index: 5, kind: input, shape index: {}]   ;;  %s1501_s6 = inlined_call_operand.vmem [shape: f32[1,128], index: 6, kind: input, shape index: {}]   ;;  %s1502_s7 = inlined_call_operand.vmem [shape: f32[16,128], index: 7, kind: output, shape index: {}]  }
   0x1   :  { %s24_s25 = sshll.u32 %s1353_s24, 4  ;;  %s25_s25 = int_to_ptr.vmem [resolvable:$true] %s24_s25 }
   0x2   :  { %s1339_s26 = scalar_lea.vmem %s25_s25, 8192  ;;  %p1344_p1 = scmp.lt.s32.totalorder %s25_s25, %s25_s25 }
   0x3   :  { %p1340_p0 = scmp.ne.s32.totalorder %s25_s25, %s1339_s26  ;;  %p1345_p2 = scmp.lt.s32.totalorder %s1339_s26, %s1339_s26 }
   0x5   :  { %p1346_p3 = por %p1345_p2, %p1344_p1 }
   0x7   :  { %p1347_p4 = pnand %p1346_p3, %p1340_p0 }
   0x9   :  { %1350 = shalt.err (!%p1347_p4)
}
   0xa   :  { %s1354_s27 = smov 64   ;;  %s1355_s28 = smov 4  }
   0xb   :  { %30 = dma.hbm_to_vmem [thread:$0]  %s1498_s3, 8192, %s25_s25, [#allocation4], %s1354_s27, %s1354_s27, %s1355_s28  }
   0xc   :  { %1351 = dma.done.wait [#allocation4], 8192  }
   0xd   :  { %1352 = vsyncadd [#allocation4], 4294959104  ;;  %v1356_v0 = vmov 0.0   ;;  %v1257_v1 = vld [vmem:[#allocation3 + $0x78] sm:$0xff]   ;;  %v1261_v5 = vld [vmem:[#allocation3 + $0x70] sm:$0xff]   ;;  %v65_v25 = vlaneseq  ;;  %vm1358_vm0 = vmmov 0  }
   0xe   :  { %42 = vst [vmem:[#allocation2 + $0x8] sm:$0xff] %v1356_v0  ;;  %41 = vst [vmem:[#allocation2] sm:$0xff] %v1356_v0  ;;  %v1258_v2 = vld [vmem:[#allocation3 + $0xf8] sm:$0xff]   ;;  %1134 = vmatprep.subr.bf16.mxu0 %v1257_v1  ;;  %v1262_v6 = vld [vmem:[#allocation3 + $0xf0] sm:$0xff]   ;;  %v1357_v23 = vmov 1983009808  }
   0xf   :  { %43 = vst [vmem:[#allocation2 + $0x10] sm:$0xff] %v1356_v0  ;;  %44 = vst [vmem:[#allocation2 + $0x18] sm:$0xff] %v1356_v0  ;;  %v1259_v3 = vld [vmem:[#allocation3 + $0x38] sm:$0xff]   ;;  %1156 = vmatprep.subr.bf16.mxu1 %v1258_v2  ;;  %v1263_v7 = vld [vmem:[#allocation3 + $0x30] sm:$0xff]   ;;  %v63_v24 = vunpack.c.l.s4 %v1357_v23  ;;  %v66_v31 = vshrl.u32 %v65_v25, 7 }
  0x10   :  { %45 = vst [vmem:[#allocation2 + $0x20] sm:$0xff] %v1356_v0  ;;  %46 = vst [vmem:[#allocation2 + $0x28] sm:$0xff] %v1356_v0  ;;  %v1260_v4 = vld [vmem:[#allocation3 + $0xb8] sm:$0xff]   ;;  %1135 = vmatpush3.bf16.msra.mxu0 %v1259_v3  ;;  %v1264_v8 = vld [vmem:[#allocation3 + $0xb0] sm:$0xff]  }
  0x11   :  { %47 = vst [vmem:[#allocation2 + $0x30] sm:$0xff] %v1356_v0  ;;  %48 = vst [vmem:[#allocation2 + $0x38] sm:$0xff] %v1356_v0  ;;  %1157 = vmatpush3.bf16.msra.mxu1 %v1260_v4  ;;  %1136 = vmatprep.subr.bf16.mxu0 %v1261_v5  ;;  %v1265_v9 = vld [vmem:[#allocation3 + $0x68] sm:$0xff]   ;;  %v1269_v13 = vld [vmem:[#allocation3 + $0x60] sm:$0xff]   ;;  %v64_v30 = vunpack.c.0.s8 %v63_v24 }
  0x12   :  { %1158 = vmatprep.subr.bf16.mxu1 %v1262_v6  ;;  %v1266_v10 = vld [vmem:[#allocation3 + $0xe8] sm:$0xff]   ;;  %v1270_v14 = vld [vmem:[#allocation3 + $0xe0] sm:$0xff]   ;;  %v1273_v17 = vld [vmem:[#allocation3 + $0x58] sm:$0xff]  }
  0x13   :  { %v1267_v11 = vld [vmem:[#allocation3 + $0x28] sm:$0xff]   ;;  %v1271_v15 = vld [vmem:[#allocation3 + $0x20] sm:$0xff]   ;;  %v1274_v18 = vld [vmem:[#allocation3 + $0xd8] sm:$0xff]   ;;  %v1410_v36 = vsub.s32 %v64_v30, %v66_v31 }
  0x14   :  { %1137 = vmatpush3.bf16.msra.mxu0 %v1263_v7  ;;  %v1268_v12 = vld [vmem:[#allocation3 + $0xa8] sm:$0xff]   ;;  %v1272_v16 = vld [vmem:[#allocation3 + $0xa0] sm:$0xff]   ;;  %v1275_v19 = vld [vmem:[#allocation3 + $0x18] sm:$0xff]  }
  0x15   :  { %1159 = vmatpush3.bf16.msra.mxu1 %v1264_v8  ;;  %1138 = vmatprep.subr.bf16.mxu0 %v1265_v9  ;;  %v1276_v20 = vld [vmem:[#allocation3 + $0x98] sm:$0xff]   ;;  %v1277_v21 = vld [vmem:[#allocation3 + $0x50] sm:$0xff]   ;;  %v1281_v28 = vld [vmem:[#allocation3 + $0x48] sm:$0xff]  }
  0x16   :  { %1160 = vmatprep.subr.bf16.mxu1 %v1266_v10  ;;  %v1278_v22 = vld [vmem:[#allocation3 + $0xd0] sm:$0xff]   ;;  %v1282_v29 = vld [vmem:[#allocation3 + $0xc8] sm:$0xff]   ;;  %v1285_v34 = vld [vmem:[#allocation3 + $0x40] sm:$0xff]  }
  0x17   :  { %v1279_v26 = vld [vmem:[#allocation3 + $0x10] sm:$0xff]   ;;  %v1283_v32 = vld [vmem:[#allocation3 + $0x8] sm:$0xff]   ;;  %v1286_v35 = vld [vmem:[#allocation3 + $0xc0] sm:$0xff]  }
  0x18   :  { %1139 = vmatpush3.bf16.msra.mxu0 %v1267_v11  ;;  %v1280_v27 = vld [vmem:[#allocation3 + $0x90] sm:$0xff]   ;;  %v1284_v33 = vld [vmem:[#allocation3 + $0x88] sm:$0xff]   ;;  %v1287_v37 = vld [vmem:[#allocation3] sm:$0xff]  }
  0x19   :  { %1161 = vmatpush3.bf16.msra.mxu1 %v1268_v12  ;;  %1140 = vmatprep.subr.bf16.mxu0 %v1269_v13  ;;  %v1288_v38 = vld [vmem:[#allocation3 + $0x80] sm:$0xff]   ;;  %v1290_v46 = vld [vmem:[#allocation3 + $0x178] sm:$0xff]   ;;  %v1294_v2 = vld [vmem:[#allocation3 + $0x170] sm:$0xff]  }
  0x1a   :  { %1162 = vmatprep.subr.bf16.mxu1 %v1270_v14  ;;  %v57_v39 = vld [vmem:[%s1495_s0] sm:$0xff]  ;;  %v1291_v49 = vld [vmem:[#allocation3 + $0x1f8] sm:$0xff]   ;;  %v1295_v7 = vld [vmem:[#allocation3 + $0x1f0] sm:$0xff]  }
  0x1b   :  { %v111_v40 = vld [vmem:[%s1496_s1] sm:$0xff]  ;;  %v68_v42 = vrot.slane %v57_v39, %v1410_v36  ;;  %v61_v45 = vcombine.high %v57_v39, %v57_v39  ;;  %1048 = vst.sshfl [vmem:[#allocation2] sm:$0x3 pattern:$0x76325410] %v57_v39  ;;  %v1292_v60 = vld [vmem:[#allocation3 + $0x138] sm:$0xff]  }
  0x1c   :  { %1141 = vmatpush3.bf16.msra.mxu0 %v1271_v15  ;;  %v165_v41 = vld [vmem:[%s1497_s2] sm:$0xff]  ;;  %v115_v43 = vcombine.low %v111_v40, %v111_v40  ;;  %1053 = vst.sshfl [vmem:[#allocation2 + $0x10] sm:$0x30 pattern:$0x76325410] %v111_v40  ;;  %v129_v47 = vrot.slane %v111_v40, %v1410_v36  ;;  %v1293_v61 = vld [vmem:[#allocation3 + $0x1b8] sm:$0xff]  }
  0x1d   :  { %1163 = vmatpush3.bf16.msra.mxu1 %v1272_v16  ;;  %1142 = vmatprep.subr.bf16.mxu0 %v1273_v17  ;;  %v176_v44 = vrot.slane %v165_v41, %v1410_v36  ;;  %1056 = vst.sshfl [vmem:[#allocation2 + $0x8] sm:$0xc pattern:$0x76325410] %v165_v41  ;;  %v169_v48 = vcombine.high %v165_v41, %v165_v41  ;;  %v1296_v8 = vld [vmem:[#allocation3 + $0x130] sm:$0xff]   ;;  %v1298_v10 = vld [vmem:[#allocation3 + $0x168] sm:$0xff]  }
  0x1e   :  { %1164 = vmatprep.subr.bf16.mxu1 %v1274_v18  ;;  %v76_v50 = vcombine.high %v68_v42, %v68_v42  ;;  %v122_v51 = vrot.slane %v115_v43, %v1410_v36  ;;  %v75_v53 = vrot.slane %v61_v45, %v1410_v36  ;;  %1049 = vst.sshfl [vmem:[#allocation2 + $0x10] sm:$0x3 pattern:$0x76325410] %v61_v45  ;;  %v1297_v9 = vld [vmem:[#allocation3 + $0x1b0] sm:$0xff]   ;;  %v1299_v11 = vld [vmem:[#allocation3 + $0x1e8] sm:$0xff]  }
  0x1f   :  { %v184_v52 = vcombine.low %v176_v44, %v176_v44  ;;  %1052 = vst.sshfl [vmem:[#allocation2] sm:$0x30 pattern:$0x76325410] %v115_v43  ;;  %v131_v54 = vcombine.high %v129_v47, %v129_v47  ;;  %v183_v55 = vrot.slane %v169_v48, %v1410_v36  ;;  %v1300_v12 = vld [vmem:[#allocation3 + $0x128] sm:$0xff]   ;;  %v1302_v14 = vld [vmem:[#allocation3 + $0x160] sm:$0xff]  }
  0x20   :  { %1143 = vmatpush3.bf16.msra.mxu0 %v1275_v19  ;;  %1057 = vst.sshfl [vmem:[#allocation2 + $0x18] sm:$0xc pattern:$0x76325410] %v169_v48  ;;  %104 = vst [vmem:[#allocation2 + $0x8] sm:$0x3] %v76_v50  ;;  %v130_v56 = vcombine.high %v122_v51, %v122_v51  ;;  %v77_v57 = vcombine.high %v75_v53, %v75_v53 }
  0x21   :  { %1165 = vmatpush3.bf16.msra.mxu1 %v1276_v20  ;;  %1144 = vmatprep.subr.bf16.mxu0 %v1277_v21  ;;  %211 = vst [vmem:[#allocation2] sm:$0x30] %v184_v52  ;;  %160 = vst [vmem:[#allocation2 + $0x18] sm:$0xc] %v131_v54  ;;  %v185_v58 = vcombine.low %v183_v55, %v183_v55  ;;  %v1301_v13 = vld [vmem:[#allocation3 + $0x1a8] sm:$0xff]   ;;  %v1303_v15 = vld [vmem:[#allocation3 + $0x1e0] sm:$0xff]  }
  0x22   :  { %1166 = vmatprep.subr.bf16.mxu1 %v1278_v22  ;;  %158 = vst [vmem:[#allocation2 + $0x8] sm:$0xc] %v130_v56  ;;  %106 = vst [vmem:[#allocation2 + $0x18] sm:$0x3] %v77_v57  ;;  %v1304_v16 = vld [vmem:[#allocation3 + $0x120] sm:$0xff]   ;;  %v1306_v18 = vld [vmem:[#allocation3 + $0x158] sm:$0xff]  }
  0x23   :  { %213 = vst [vmem:[#allocation2 + $0x10] sm:$0x30] %v185_v58  ;;  %v1305_v17 = vld [vmem:[#allocation3 + $0x1a0] sm:$0xff]   ;;  %v1307_v19 = vld [vmem:[#allocation3 + $0x1d8] sm:$0xff]   ;;  %v1310_v22 = vld [vmem:[#allocation3 + $0x150] sm:$0xff]  }
  0x24   :  { %1145 = vmatpush3.bf16.msra.mxu0 %v1279_v26  ;;  %v1308_v20 = vld [vmem:[#allocation3 + $0x118] sm:$0xff]   ;;  %v1311_v23 = vld [vmem:[#allocation3 + $0x1d0] sm:$0xff]   ;;  %v1314_v26 = vld [vmem:[#allocation3 + $0x148] sm:$0xff]  }
  0x25   :  { %1167 = vmatpush3.bf16.msra.mxu1 %v1280_v27  ;;  %1146 = vmatprep.subr.bf16.mxu0 %v1281_v28  ;;  %v1309_v21 = vld [vmem:[#allocation3 + $0x198] sm:$0xff]   ;;  %v1312_v24 = vld [vmem:[#allocation3 + $0x110] sm:$0xff]   ;;  %v1315_v27 = vld [vmem:[#allocation3 + $0x1c8] sm:$0xff]  }
  0x26   :  { %1168 = vmatprep.subr.bf16.mxu1 %v1282_v29  ;;  %v1313_v25 = vld [vmem:[#allocation3 + $0x190] sm:$0xff]   ;;  %v58_v28 = vld [vmem:[%s1495_s0 + $0x8] sm:$0xff]  ;;  %v1318_v43 = vld [vmem:[#allocation3 + $0x140] sm:$0xff]  }
  0x27   :  { %v112_v29 = vld [vmem:[%s1496_s1 + $0x8] sm:$0xff]  ;;  %v85_v30 = vrot.slane %v58_v28, %v1410_v36  ;;  %1050 = vst.sshfl [vmem:[#allocation2 + $0x20] sm:$0x3 pattern:$0x76325410] %v58_v28  ;;  %v1320_v51 = vld [vmem:[#allocation3 + $0x100] sm:$0xff]  }
  0x28   :  { %1147 = vmatpush3.bf16.msra.mxu0 %v1283_v32  ;;  %v219_v59 = vld [vmem:[#allocation2] sm:$0xff]  ;;  %v132_v31 = vcombine.low %v112_v29, %v112_v29  ;;  %v166_v32 = vld [vmem:[%s1497_s2 + $0x8] sm:$0xff]  ;;  %1055 = vst.sshfl [vmem:[#allocation2 + $0x30] sm:$0x30 pattern:$0x76325410] %v112_v29 }
  0x29   :  { %1169 = vmatpush3.bf16.msra.mxu1 %v1284_v33  ;;  %1148 = vmatprep.subr.bf16.mxu0 %v1285_v34  ;;  %v220_v62 = vld [vmem:[#allocation2 + $0x8] sm:$0xff]  ;;  %v222_v63 = vld [vmem:[#allocation2 + $0x18] sm:$0xff]  ;;  %v381_v1 = vpack.c.bf16 %v1356_v0, %v219_v59  ;;  %v78_v33 = vcombine.high %v58_v28, %v58_v28  ;;  %v193_v34 = vrot.slane %v166_v32, %v1410_v36  ;;  %v1321_v52 = vld [vmem:[#allocation3 + $0x180] sm:$0xff]  }
  0x2a   :  { %1170 = vmatprep.subr.bf16.mxu1 %v1286_v35  ;;  %v382_v3 = vpack.c.bf16 %v1356_v0, %v220_v62  ;;  %v384_v4 = vpack.c.bf16 %v1356_v0, %v222_v63  ;;  %v221_v5 = vld [vmem:[#allocation2 + $0x10] sm:$0xff]  ;;  %1058 = vst.sshfl [vmem:[#allocation2 + $0x28] sm:$0xc pattern:$0x76325410] %v166_v32  ;;  %v146_v35 = vrot.slane %v112_v29, %v1410_v36  ;;  %v1317_v39 = vld [vmem:[#allocation3 + $0x188] sm:$0xff]  }
  0x2b   :  { %v383_v6 = vpack.c.bf16 %v1356_v0, %v221_v5  ;;  %v93_v40 = vcombine.high %v85_v30, %v85_v30  ;;  %v139_v41 = vrot.slane %v132_v31, %v1410_v36  ;;  %1054 = vst.sshfl [vmem:[#allocation2 + $0x20] sm:$0x30 pattern:$0x76325410] %v132_v31  ;;  %v92_v42 = vrot.slane %v78_v33, %v1410_v36  ;;  %v1325_v62 = vld [vmem:[%s1500_s5 + $0x28] sm:$0xff]   ;;  %v1326_v63 = vld [vmem:[%s1500_s5 + $0x20] sm:$0xff]  }
  0x2c   :  { %1149 = vmatpush3.bf16.msra.mxu0 %v1287_v37  ;;  %811 = vmatprep.mubr.bf16.mxu0 %v382_v3  ;;  %v186_v37 = vcombine.high %v166_v32, %v166_v32  ;;  %1051 = vst.sshfl [vmem:[#allocation2 + $0x30] sm:$0x3 pattern:$0x76325410] %v78_v33  ;;  %v201_v44 = vcombine.low %v193_v34, %v193_v34  ;;  %v1329_v3 = vld [vmem:[%s1500_s5 + $0x8] sm:$0xff]  }
  0x2d   :  { %1171 = vmatpush3.bf16.msra.mxu1 %v1288_v38  ;;  %1178 = vmatprep.subr.bf16.mxu0 %v1290_v46  ;;  %v1316_v38 = vld [vmem:[#allocation3 + $0x108] sm:$0xff]   ;;  %v148_v45 = vcombine.high %v146_v35, %v146_v35  ;;  %108 = vst [vmem:[#allocation2 + $0x28] sm:$0x3] %v93_v40  ;;  %v147_v47 = vcombine.high %v139_v41, %v139_v41  ;;  %v1125_v41 = vld [vmem:[%s1501_s6] ss:$0 sm:$0xff] }
  0x2e   :  { %1200 = vmatprep.subr.bf16.mxu1 %v1291_v49  ;;  %852 = vmatprep.mubr.bf16.mxu1 %v384_v4  ;;  %v200_v46 = vrot.slane %v186_v37, %v1410_v36  ;;  %1059 = vst.sshfl [vmem:[#allocation2 + $0x38] sm:$0xc pattern:$0x76325410] %v186_v37  ;;  %v94_v48 = vcombine.high %v92_v42, %v92_v42  ;;  %v1319_v49 = vld [vmem:[#allocation3 + $0x1c0] sm:$0xff]  }
  0x2f   :  { %812 = vmatmul.mubr.bf16.vlgmr.msra.gmra.mxu0 %v381_v1  ;;  %215 = vst [vmem:[#allocation2 + $0x20] sm:$0x30] %v201_v44  ;;  %164 = vst [vmem:[#allocation2 + $0x38] sm:$0xc] %v148_v45  ;;  %v1327_v1 = vld [vmem:[%s1500_s5 + $0x18] sm:$0xff]   ;;  %v1330_v4 = vld [vmem:[%s1500_s5] sm:$0xff]  }
  0x30   :  { %853 = vmatmul.mubr.bf16.vlgmr.msra.gmra.mxu1 %v383_v6  ;;  %1179 = vmatpush3.bf16.msra.mxu0 %v1292_v60  ;;  %v202_v50 = vcombine.low %v200_v46, %v200_v46  ;;  %162 = vst [vmem:[#allocation2 + $0x28] sm:$0xc] %v147_v47  ;;  %110 = vst [vmem:[#allocation2 + $0x38] sm:$0x3] %v94_v48  ;;  %v1323_v60 = vld [vmem:[%s1500_s5 + $0x38] sm:$0xff]  }
  0x31   :  { %1201 = vmatpush3.bf16.msra.mxu1 %v1293_v61  ;;  %1180 = vmatprep.subr.bf16.mxu0 %v1294_v2  ;;  %v1324_v61 = vld [vmem:[%s1500_s5 + $0x30] sm:$0xff]  }
  0x32   :  { %1202 = vmatprep.subr.bf16.mxu1 %v1295_v7  ;;  %217 = vst [vmem:[#allocation2 + $0x30] sm:$0x30] %v202_v50  ;;  %v1328_v2 = vld [vmem:[%s1500_s5 + $0x10] sm:$0xff]  }
  0x34   :  { %1181 = vmatpush3.bf16.msra.mxu0 %v1296_v8 }
  0x35   :  { %1203 = vmatpush3.bf16.msra.mxu1 %v1297_v9  ;;  %1182 = vmatprep.subr.bf16.mxu0 %v1298_v10 }
  0x36   :  { %1204 = vmatprep.subr.bf16.mxu1 %v1299_v11  ;;  %v223_v36 = vld [vmem:[#allocation2 + $0x20] sm:$0xff] }
  0x37   :  { %v224_v53 = vld [vmem:[#allocation2 + $0x28] sm:$0xff]  ;;  %v226_v54 = vld [vmem:[#allocation2 + $0x38] sm:$0xff]  ;;  %v385_v55 = vpack.c.bf16 %v1356_v0, %v223_v36 }
  0x38   :  { %1183 = vmatpush3.bf16.msra.mxu0 %v1300_v12  ;;  %v386_v56 = vpack.c.bf16 %v1356_v0, %v224_v53  ;;  %v388_v57 = vpack.c.bf16 %v1356_v0, %v226_v54  ;;  %v1060_v12 = vld [vmem:[%s1499_s4] ss:$0 sm:$0xff] }
  0x39   :  { %1205 = vmatpush3.bf16.msra.mxu1 %v1301_v13  ;;  %1184 = vmatprep.subr.bf16.mxu0 %v1302_v14  ;;  %v225_v58 = vld [vmem:[#allocation2 + $0x30] sm:$0xff] }
  0x3a   :  { %1206 = vmatprep.subr.bf16.mxu1 %v1303_v15  ;;  %v387_v59 = vpack.c.bf16 %v1356_v0, %v225_v58  ;;  %893 = vmatprep.mubr.bf16.mxu0 %v386_v56 }
  0x3b   :  { %934 = vmatprep.mubr.bf16.mxu1 %v388_v57 }
  0x3c   :  { %1185 = vmatpush3.bf16.msra.mxu0 %v1304_v16 }
  0x3d   :  { %1207 = vmatpush3.bf16.msra.mxu1 %v1305_v17  ;;  %1186 = vmatprep.subr.bf16.mxu0 %v1306_v18 }
  0x3e   :  { %1208 = vmatprep.subr.bf16.mxu1 %v1307_v19 }
  0x40   :  { %1187 = vmatpush3.bf16.msra.mxu0 %v1308_v20 }
  0x41   :  { %1209 = vmatpush3.bf16.msra.mxu1 %v1309_v21  ;;  %1188 = vmatprep.subr.bf16.mxu0 %v1310_v22 }
  0x42   :  { %1210 = vmatprep.subr.bf16.mxu1 %v1311_v23 }
  0x44   :  { %1189 = vmatpush3.bf16.msra.mxu0 %v1312_v24 }
  0x45   :  { %1211 = vmatpush3.bf16.msra.mxu1 %v1313_v25  ;;  %1190 = vmatprep.subr.bf16.mxu0 %v1314_v26 }
  0x46   :  { %1212 = vmatprep.subr.bf16.mxu1 %v1315_v27 }
  0x48   :  { %1191 = vmatpush3.bf16.msra.mxu0 %v1316_v38 }
  0x49   :  { %1213 = vmatpush3.bf16.msra.mxu1 %v1317_v39  ;;  %1192 = vmatprep.subr.bf16.mxu0 %v1318_v43 }
  0x4a   :  { %1214 = vmatprep.subr.bf16.mxu1 %v1319_v49 }
  0x4c   :  { %1193 = vmatpush3.bf16.msra.mxu0 %v1320_v51 }
  0x4d   :  { %1215 = vmatpush3.bf16.msra.mxu1 %v1321_v52  ;;  %1231 = vmatprep.subr.bf16.mxu0 %v1356_v0 }
  0x4f   :  { %894 = vmatmul.mubr.bf16.vlgmr.msra.gmra.mxu0 %v385_v55 }
  0x50   :  { %935 = vmatmul.mubr.bf16.vlgmr.msra.gmra.mxu1 %v387_v59  ;;  %1232 = vmatpush3.bf16.msra.mxu0 %v1323_v60 }
  0x51   :  { %1233 = vmatprep.subr.bf16.mxu0 %v1356_v0  ;;  %1247 = vmatprep.mubr.msk.bf16.mxu0 %vm1358_vm0, %v1356_v0 }
  0x54   :  { %1234 = vmatpush3.bf16.msra.mxu0 %v1324_v61 }
  0x55   :  { %1235 = vmatprep.subr.bf16.mxu0 %v1356_v0 }
  0x58   :  { %1236 = vmatpush3.bf16.msra.mxu0 %v1325_v62 }
  0x59   :  { %1237 = vmatprep.subr.bf16.mxu0 %v1356_v0 }
  0x5c   :  { %1238 = vmatpush3.bf16.msra.mxu0 %v1326_v63 }
  0x5d   :  { %1239 = vmatprep.subr.bf16.mxu0 %v1356_v0 }
  0x60   :  { %1240 = vmatpush3.bf16.msra.mxu0 %v1327_v1 }
  0x61   :  { %1241 = vmatprep.subr.bf16.mxu0 %v1356_v0 }
  0x64   :  { %1242 = vmatpush3.bf16.msra.mxu0 %v1328_v2 }
  0x65   :  { %1243 = vmatprep.subr.bf16.mxu0 %v1356_v0 }
  0x68   :  { %1244 = vmatpush3.bf16.msra.mxu0 %v1329_v3 }
  0x69   :  { %1245 = vmatprep.subr.bf16.mxu0 %v1356_v0 }
  0x6c   :  { %1246 = vmatpush3.bf16.msra.mxu0 %v1330_v4 }
  0xef   :  { %v1150_v5 = vpop.f32.mrf.mxu0 }
  0xf0   :  { %v1172_v6 = vpop.f32.mrf.mxu1 }
  0xf1   :  { %v1151_v7 = vpop.f32.mrf.mxu0 }
  0xf2   :  { %v1173_v8 = vpop.f32.mrf.mxu1  ;;  %v1152_v11 = vadd.f32 %v1151_v7, %v1150_v5 }
  0xf3   :  { %v1153_v9 = vpop.f32.mrf.mxu0  ;;  %v1174_v16 = vadd.f32 %v1173_v8, %v1172_v6 }
  0xf4   :  { %v1175_v10 = vpop.f32.mrf.mxu1  ;;  %v814_v15 = vadd.f32 %v1152_v11, %v1060_v12 }
  0xf5   :  { %v1154_v13 = vpop.f32.mrf.mxu0 }
  0xf6   :  { %v1176_v14 = vpop.f32.mrf.mxu1  ;;  %v1155_v17 = vadd.f32 %v1154_v13, %v1153_v9  ;;  %v855_v21 = vadd.f32 %v1174_v16, %v814_v15 }
  0xf7   :  { %v1177_v26 = vadd.f32 %v1176_v14, %v1175_v10 }
  0xf8   :  { %v817_v22 = vadd.f32 %v1155_v17, %v1060_v12 }
  0xfa   :  { %v858_v30 = vadd.f32 %v1177_v26, %v817_v22 }
 0x10f   :  { %v1194_v18 = vpop.f32.mrf.mxu0 }
 0x110   :  { %v1216_v19 = vpop.f32.mrf.mxu1 }
 0x111   :  { %v1195_v20 = vpop.f32.mrf.mxu0 }
 0x112   :  { %v1217_v0 = vpop.f32.mrf.mxu1  ;;  %v1196_v23 = vadd.f32 %v1195_v20, %v1194_v18 }
 0x113   :  { %v1197_v24 = vpop.f32.mrf.mxu0  ;;  %v1218_v31 = vadd.f32 %v1217_v0, %v1216_v19 }
 0x114   :  { %v1219_v25 = vpop.f32.mrf.mxu1  ;;  %v896_v27 = vadd.f32 %v1196_v23, %v855_v21 }
 0x115   :  { %v1198_v28 = vpop.f32.mrf.mxu0 }
 0x116   :  { %v1220_v29 = vpop.f32.mrf.mxu1  ;;  %v1199_v32 = vadd.f32 %v1198_v28, %v1197_v24  ;;  %v937_v33 = vadd.f32 %v1218_v31, %v896_v27 }
 0x117   :  { %v1221_v35 = vadd.f32 %v1220_v29, %v1219_v25 }
 0x118   :  { %v899_v34 = vadd.f32 %v1199_v32, %v858_v30  ;;  %v943_v38 = vmax.f32 %v937_v33, 0.0 }
 0x11a   :  { %v940_v37 = vadd.f32 %v1221_v35, %v899_v34 }
 0x11c   :  { %v944_v39 = vmax.f32 %v940_v37, 0.0 }
 0x11e   :  { %v945_v40 = vpack.c.bf16 %v944_v39, %v943_v38 }
 0x120   :  { %1248 = vmatmul.mubr.bf16.vlgmr.msra.gmra.mxu0 %v945_v40 }
 0x1e0   :  { %v1034_v42 = vpop.f32.mrf.mxu0 }
 0x1e1   :  { %v1035_v43 = vadd.f32 %v1125_v41, %v1034_v42 }
 0x1e2   :  { %v1249_v44 = vpop.f32.mrf.mxu0 }
 0x1e3   :  { %1041 = vst [vmem:[%s1502_s7] sm:$0xff] %v1035_v43 }
 0x1e4   :  { %v1037_v45 = vpop.f32.mrf.mxu0 }
 0x1e5   :  { %v1038_v46 = vadd.f32 %v1125_v41, %v1037_v45 }
 0x1e6   :  { %v1250_v47 = vpop.f32.mrf.mxu0 }
 0x1e7   :  { %1042 = vst [vmem:[%s1502_s7 + $0x8] sm:$0xff] %v1038_v46 }
 0x1e8   :  { %1047 = vsyncpa [#allocation4], 1 }

</bundles_post_ra>
